<compile_context>
chip_gen: v6e
topology: v6e:2x2x1
jax: 0.10.0
libtpu: 0.0.40
codegen_flags: <defaults>
</compile_context>

<pallas_src>
from functools import partial

import jax
import jax.numpy as jnp
from jax import lax
from jax.experimental import pallas as pl
from jax.experimental.pallas import tpu as pltpu


def _round_up(x, m):
    return ((x + m - 1) // m) * m


def _points_to_grid_kernel(vals_ref, cluster_ref, out_ref, acc_ref, *, tg,
                           count_row):
    gi = pl.program_id(0)          # cell-tile index   ("parallel")
    ni = pl.program_id(1)          # point-tile index  ("arbitrary", reduction)

    @pl.when(ni == 0)
    def _():
        acc_ref[...] = jnp.zeros_like(acc_ref)

    # Per-point flat cluster id, shifted into this cell tile's local range.
    # Padded / out-of-domain points carry id -1 -> never match the iota.
    local = cluster_ref[...] - gi * tg                       # (TN, 1) i32
    tn = local.shape[0]
    lane = lax.broadcasted_iota(jnp.int32, (tn, tg), 1)      # (TN, TG)
    onehot = (lane == local).astype(jnp.bfloat16)            # exact in bf16

    # values_aug (Cp, TN) @ onehot (TN, TG) -> (Cp, TG), f32 accumulation.
    # The ones-row of values_aug makes row `count_row` the per-cell count.
    acc_ref[...] += lax.dot_general(
        vals_ref[...], onehot,
        dimension_numbers=(((1,), (0,)), ((), ())),
        preferred_element_type=jnp.float32)

    @pl.when(ni == pl.num_programs(1) - 1)
    def _():
        acc = acc_ref[...]                                   # (Cp, TG)
        counts = acc[count_row:count_row + 1, :]             # (1, TG)
        inv = pl.reciprocal(jnp.maximum(counts, 1.0), approx=False)
        row = lax.broadcasted_iota(jnp.int32, acc.shape, 0)
        # Rows 0..C-1 -> scatter-mean; row C keeps the raw counts.
        scale = jnp.where(row == count_row, jnp.float32(1.0), inv)
        out_ref[...] = acc * scale


def points_to_grid(values, pos, batch, *, subdomain_size_x, subdomain_size_y,
                   domain_size_x, domain_size_y, num_batches):
    """values: (N, C) f32, pos: (N, 2) f32, batch: (N,) i32 (in [0, num_batches))."""
    n, c = values.shape
    nx = int(domain_size_x // subdomain_size_x) + 1
    ny = int(domain_size_y // subdomain_size_y) + 1
    g = num_batches * nx * ny

    cp = _round_up(c + 1, 8)                 # channels + ones-row, sublane-padded

    # --- tile choices ------------------------------------------------------
    tn = min(2048, _round_up(n, 128))        # point tile (bounds one-hot VMEM)
    np_ = _round_up(n, tn)

    onehot_budget = 12 * 1024 * 1024         # bf16 one-hot + i32 iota temp
    gmin = _round_up(g, 256)                 # v6e/v7x MXU result width
    if gmin <= 512:
        tg = gmin                            # tiny cell axis: single tile
    else:
        # largest mult-of-256 tile within the one-hot budget, but keep >= 2
        # gi tiles so the "parallel" axis shards across TCs (v7x megacore).
        tg_cap = max(256, min(2048, (onehot_budget // (6 * tn)) // 256 * 256))
        tg = min(tg_cap, _round_up((gmin + 1) // 2, 256))
    gp = _round_up(g, tg)                    # lane-dense, tile-aligned cell axis

    # --- layout prep (cheap O(N) XLA ops, outside the hot loop) -------------
    sx = float(subdomain_size_x)
    sy = float(subdomain_size_y)
    cx = jnp.floor(pos[:, 0].astype(jnp.float32) / sx).astype(jnp.int32)
    cy = jnp.floor(pos[:, 1].astype(jnp.float32) / sy).astype(jnp.int32)
    b = batch.astype(jnp.int32)
    in_dom = ((cx >= 0) & (cx < nx) & (cy >= 0) & (cy < ny)
              & (b >= 0) & (b < num_batches))
    cluster = jnp.where(in_dom, b * (nx * ny) + cy * nx + cx, -1)
    cluster_p = jnp.pad(cluster, (0, np_ - n),
                        constant_values=-1).reshape(np_, 1)          # (Np, 1)

    vals_bf = values.astype(jnp.bfloat16)
    values_aug = jnp.concatenate(
        [vals_bf.T,
         jnp.ones((1, n), jnp.bfloat16),
         jnp.zeros((cp - c - 1, n), jnp.bfloat16)], axis=0)          # (Cp, N)
    values_aug = jnp.pad(values_aug, ((0, 0), (0, np_ - n)))          # (Cp, Np)

    kernel = partial(_points_to_grid_kernel, tg=tg, count_row=c)

    # VMEM budget: double-buffered inputs/output + accumulator + one-hot temps.
    vmem_need = (2 * cp * tn * 2          # values_aug tile (bf16, 2 bufs)
                 + 2 * tn * 4             # cluster tile (i32, 2 bufs)
                 + 2 * cp * tg * 4        # output tile (f32, 2 bufs)
                 + cp * tg * 4            # accumulator scratch
                 + tn * tg * (2 + 4))     # bf16 one-hot + i32 iota temp
    vmem_limit = min(max(vmem_need + (4 << 20), 16 << 20), 32 << 20)

    out = pl.pallas_call(
        kernel,
        out_shape=jax.ShapeDtypeStruct((cp, gp), jnp.float32),
        grid=(gp // tg, np_ // tn),
        in_specs=[
            pl.BlockSpec((cp, tn), lambda gi, ni: (0, ni)),   # values_aug
            pl.BlockSpec((tn, 1), lambda gi, ni: (ni, 0)),    # cluster ids
        ],
        out_specs=pl.BlockSpec((cp, tg), lambda gi, ni: (0, gi)),
        scratch_shapes=[pltpu.VMEM((cp, tg), jnp.float32)],
        compiler_params=pltpu.CompilerParams(
            dimension_semantics=("parallel", "arbitrary"),
            vmem_limit_bytes=vmem_limit),
        cost_estimate=pl.CostEstimate(
            flops=2 * np_ * gp * cp,
            transcendentals=0,
            bytes_accessed=(gp // tg) * np_ * (cp * 2 + 4) + gp * cp * 4),
    )(values_aug, cluster_p)

    means = out[:c, :g]                    # (C, G) scatter-mean
    counts = out[c, :g]                    # (G,)  raw per-cell counts
    # layout: NCHW output -> (batch, channels, ny_cells, nx_cells)
    grid_nchw = means.reshape(c, num_batches, ny, nx).transpose(1, 0, 2, 3)
    return grid_nchw, counts.reshape(num_batches, ny, nx)


if __name__ == "__main__":
    key = jax.random.PRNGKey(0)
    k_val, k_pos = jax.random.split(key)

    N, C, B = 64, 4, 2
    domain_x = domain_y = 16.0
    sub_x = sub_y = 4.0

    values = jax.random.normal(k_val, (N, C), dtype=jnp.float32)
    pos = jax.random.uniform(k_pos, (N, 2), minval=0.0, maxval=domain_x,
                             dtype=jnp.float32)
    batch = jnp.concatenate([jnp.zeros(N // 2, jnp.int32),
                             jnp.ones(N // 2, jnp.int32)])

    grid_out, counts = points_to_grid(
        values, pos, batch,
        subdomain_size_x=sub_x, subdomain_size_y=sub_y,
        domain_size_x=domain_x, domain_size_y=domain_y, num_batches=B)
    jax.block_until_ready(grid_out)

    # Pure-JAX f32 reference (scatter-mean, identical cluster indexing).
    nx = int(domain_x // sub_x) + 1
    ny = int(domain_y // sub_y) + 1
    cx = jnp.floor(pos[:, 0] / sub_x).astype(jnp.int32)
    cy = jnp.floor(pos[:, 1] / sub_y).astype(jnp.int32)
    cluster = batch * (nx * ny) + cy * nx + cx
    sums = jnp.zeros((B * nx * ny, C), jnp.float32).at[cluster].add(values)
    cnts = jnp.zeros((B * nx * ny,), jnp.float32).at[cluster].add(1.0)
    ref = sums / jnp.maximum(cnts, 1.0)[:, None]
    ref = ref.reshape(B, ny, nx, C).transpose(0, 3, 1, 2)

    assert grid_out.shape == (B, C, ny, nx)
    # Values go through one bf16 cast (~2^-9 relative); counts are exact.
    assert jnp.allclose(grid_out, ref, atol=1e-2, rtol=1e-2), "mismatch vs reference"
    assert jnp.allclose(counts.reshape(-1), cnts, atol=1e-5), "count mismatch"
    print("KERNEL_OK")
</pallas_src>

<mosaic_0001>
module attributes {stable_mosaic.version = 11 : i64} {
  func.func @_points_to_grid_kernel(%arg0: i32, %arg1: i32, %arg2: memref<8x128xbf16, #tpu.memory_space<vmem>>, %arg3: memref<128x1xi32, #tpu.memory_space<vmem>>, %arg4: memref<8x256xf32, #tpu.memory_space<vmem>>, %arg5: memref<8x256xf32, #tpu.memory_space<vmem>>) attributes {dimension_semantics = [#tpu.dimension_semantics<parallel>, #tpu.dimension_semantics<arbitrary>], iteration_bounds = array<i64: 1, 1>, scalar_prefetch = 0 : i64, scratch_operands = 1 : i64, tpu.core_type = #tpu.core_type<tc>, window_params = [{transform_indices = @transform_0, window_bounds = array<i64: 8, 128>}, {transform_indices = @transform_1, window_bounds = array<i64: 128, 1>}, {transform_indices = @transform_2, window_bounds = array<i64: 8, 256>}]} {
    %c0_i32 = arith.constant 0 : i32
    %0 = arith.cmpi eq, %arg1, %c0_i32 : i32
    %1 = arith.extui %0 : i1 to i32
    %c0_i32_0 = arith.constant 0 : i32
    %2 = arith.cmpi ne, %1, %c0_i32_0 : i32
    scf.if %2 {
      %cst_10 = arith.constant 0.000000e+00 : f32
      %21 = vector.broadcast %cst_10 : f32 to vector<8x256xf32>
      %c0_11 = arith.constant 0 : index
      %c0_12 = arith.constant 0 : index
      %22 = vector.load %arg5[%c0_11, %c0_12] : memref<8x256xf32, #tpu.memory_space<vmem>>, vector<8x256xf32>
      tpu.vector_store %arg5[%c0_11, %c0_12], %21 {strides = array<i32>} : memref<8x256xf32, #tpu.memory_space<vmem>>, vector<8x256xf32>,
    } else {
    }
    %c0 = arith.constant 0 : index
    %c0_1 = arith.constant 0 : index
    %3 = vector.load %arg3[%c0, %c0_1] : memref<128x1xi32, #tpu.memory_space<vmem>>, vector<128x1xi32>
    %c256_i32 = arith.constant 256 : i32
    %4 = arith.muli %arg0, %c256_i32 : i32
    %5 = vector.broadcast %4 : i32 to vector<128x1xi32>
    %6 = arith.subi %3, %5 : vector<128x1xi32>
    %7 = tpu.iota {dimensions = array<i32: 1>} : vector<128x256xi32>
    %8 = vector.broadcast %6 : vector<128x1xi32> to vector<128x256xi32>
    %9 = arith.cmpi eq, %7, %8 : vector<128x256xi32>
    %10 = arith.extui %9 : vector<128x256xi1> to vector<128x256xi32>
    %11 = arith.sitofp %10 : vector<128x256xi32> to vector<128x256xf32>
    %12 = arith.truncf %11 : vector<128x256xf32> to vector<128x256xbf16>
    %c0_2 = arith.constant 0 : index
    %c0_3 = arith.constant 0 : index
    %13 = vector.load %arg5[%c0_2, %c0_3] : memref<8x256xf32, #tpu.memory_space<vmem>>, vector<8x256xf32>
    %c0_4 = arith.constant 0 : index
    %c0_5 = arith.constant 0 : index
    %14 = vector.load %arg2[%c0_4, %c0_5] : memref<8x128xbf16, #tpu.memory_space<vmem>>, vector<8x128xbf16>
    %cst = arith.constant dense<0.000000e+00> : vector<8x256xf32>
    %15 = tpu.matmul %14, %12, %cst {dimension_numbers = #tpu.dot_dimension_numbers<[1], [0], [0], [1], [0, 0, 1, 1], [], []>} : vector<8x128xbf16>, vector<128x256xbf16>, vector<8x256xf32> -> vector<8x256xf32>
    %16 = arith.addf %13, %15 : vector<8x256xf32>
    %c0_6 = arith.constant 0 : index
    %c0_7 = arith.constant 0 : index
    %17 = vector.load %arg5[%c0_6, %c0_7] : memref<8x256xf32, #tpu.memory_space<vmem>>, vector<8x256xf32>
    tpu.vector_store %arg5[%c0_6, %c0_7], %16 {strides = array<i32>} : memref<8x256xf32, #tpu.memory_space<vmem>>, vector<8x256xf32>,
    %c0_i32_8 = arith.constant 0 : i32
    %18 = arith.cmpi eq, %arg1, %c0_i32_8 : i32
    %19 = arith.extui %18 : i1 to i32
    %c0_i32_9 = arith.constant 0 : i32
    %20 = arith.cmpi ne, %19, %c0_i32_9 : i32
    scf.if %20 {
      %c0_10 = arith.constant 0 : index
      %c0_11 = arith.constant 0 : index
      %21 = vector.load %arg5[%c0_10, %c0_11] : memref<8x256xf32, #tpu.memory_space<vmem>>, vector<8x256xf32>
      %22 = vector.extract_strided_slice %21 {offsets = [4, 0], sizes = [1, 256], strides = [1, 1]} : vector<8x256xf32> to vector<1x256xf32>
      %cst_12 = arith.constant 1.000000e+00 : f32
      %23 = vector.broadcast %cst_12 : f32 to vector<1x256xf32>
      %24 = arith.maximumf %22, %23 : vector<1x256xf32>
      %25 = tpu.reciprocal %24 : vector<1x256xf32> -> vector<1x256xf32>
      %26 = tpu.iota {dimensions = array<i32: 0>} : vector<8x256xi32>
      %c4_i32 = arith.constant 4 : i32
      %27 = vector.broadcast %c4_i32 : i32 to vector<8x256xi32>
      %28 = arith.cmpi eq, %26, %27 : vector<8x256xi32>
      %cst_13 = arith.constant 1.000000e+00 : f32
      %29 = vector.broadcast %cst_13 : f32 to vector<8x256xf32>
      %30 = vector.shape_cast %25 : vector<1x256xf32> to vector<1x256xf32>
      %31 = vector.broadcast %30 : vector<1x256xf32> to vector<8x256xf32>
      %32 = arith.select %28, %29, %31 : vector<8x256xi1>, vector<8x256xf32>
      %33 = arith.mulf %21, %32 : vector<8x256xf32>
      %c0_14 = arith.constant 0 : index
      %c0_15 = arith.constant 0 : index
      %34 = vector.load %arg4[%c0_14, %c0_15] : memref<8x256xf32, #tpu.memory_space<vmem>>, vector<8x256xf32>
      tpu.vector_store %arg4[%c0_14, %c0_15], %33 {strides = array<i32>} : memref<8x256xf32, #tpu.memory_space<vmem>>, vector<8x256xf32>,
    } else {
    }
    return
  }
  func.func @transform_0(%arg0: i32, %arg1: i32) -> (i32, i32) {
    %c0_i32 = arith.constant 0 : i32
    %c0_i32_0 = arith.constant 0 : i32
    return %c0_i32, %arg1 : i32, i32
  }
  func.func @transform_1(%arg0: i32, %arg1: i32) -> (i32, i32) {
    %c0_i32 = arith.constant 0 : i32
    %c0_i32_0 = arith.constant 0 : i32
    return %arg1, %c0_i32 : i32, i32
  }
  func.func @transform_2(%arg0: i32, %arg1: i32) -> (i32, i32) {
    %c0_i32 = arith.constant 0 : i32
    %c0_i32_0 = arith.constant 0 : i32
    return %c0_i32, %arg0 : i32, i32
  }
}

</mosaic_0001>

<bundles_post_ra>
// kernel: tpu_custom_call.1
= control target key start
LH: loop header
LB: loop body
LE: loop exit
PB: predicated region body
PF: predicated region fallthrough
CT: control target
= control target key end

     0   :  { %v399_v2 = vmov 0   ;;  %s526_s0 = inlined_call_operand.vmem [shape: bf16[8,128], index: 0, kind: input, shape index: {}]   ;;  %s527_s1 = inlined_call_operand.vmem [shape: s32[128,1], index: 1, kind: input, shape index: {}]   ;;  %s528_s2 = inlined_call_operand.hbm [shape: f32[8,256], index: 2, kind: output, shape index: {}]  }
   0x1   :  { %v33_v0 = vld [vmem:[%s527_s1 + $0x70] sm:$0xff]  ;;  %v31_v1 = vld [vmem:[%s527_s1 + $0x60] sm:$0xff]  ;;  %372 = vset.pattern.permute.xlu1 %v399_v2  ;;  %371 = vset.pattern.permute.xlu0 %v399_v2  ;;  %v34_v3 = vld [vmem:[%s527_s1 + $0x78] sm:$0xff] }
   0x2   :  { %99 = vperm.xlu0 %371, %v33_v0   ;;  %93 = vperm.xlu1 %372, %v31_v1   ;;  %v32_v4 = vld [vmem:[%s527_s1 + $0x68] sm:$0xff] }
   0x3   :  { %251 = vmatprep.mubr.bf16.mxu0 %v399_v2 }
   0x4   :  { %7 = vsyncpa [#allocation4], 0  ;;  %v30_v5 = vld [vmem:[%s527_s1 + $0x58] sm:$0xff]  ;;  %v29_v6 = vld [vmem:[%s527_s1 + $0x50] sm:$0xff]  ;;  %v53_v17 = vlaneseq  ;;  %v400_v26 = vmov 1.0|1.0  }
   0x5   :  { %v28_v7 = vld [vmem:[%s527_s1 + $0x48] sm:$0xff]  ;;  %v27_v8 = vld [vmem:[%s527_s1 + $0x40] sm:$0xff]  ;;  %v26_v9 = vld [vmem:[%s527_s1 + $0x38] sm:$0xff]  ;;  %s401_s14 = smov [#allocation3]  }
   0x6   :  { %102 = vperm.xlu0 %371, %v34_v3   ;;  %96 = vperm.xlu1 %372, %v32_v4   ;;  %v25_v10 = vld [vmem:[%s527_s1 + $0x30] sm:$0xff]  ;;  %v24_v11 = vld [vmem:[%s527_s1 + $0x28] sm:$0xff]  ;;  %v23_v12 = vld [vmem:[%s527_s1 + $0x20] sm:$0xff]  ;;  %v466_v18 = vand.u32 127, %v53_v17  ;;  %v274_v44 = vshrl.u32 %v53_v17, 7 }
   0x7   :  { %v22_v13 = vld [vmem:[%s527_s1 + $0x18] sm:$0xff]  ;;  %v21_v14 = vld [vmem:[%s527_s1 + $0x10] sm:$0xff]  ;;  %v20_v15 = vld [vmem:[%s527_s1 + $0x8] sm:$0xff] }
   0x8   :  { %v19_v16 = vld [vmem:[%s527_s1] sm:$0xff]  ;;  %v469_v21 = vadd.s32 128, %v466_v18  ;;  %v278_v45 = vsub.s32 4, %v274_v44 }
   0x9   :  { %v218_v37 = vld [vmem:[%s526_s0] sm:$0xf]  ;;  %s296_s0 = sshll.u32 %s401_s14, 4  ;;  %s297_s0 = int_to_ptr.vmem [resolvable:$true] %s296_s0 }
   0xa   :  { %90 = vperm.xlu1 %372, %v30_v5   ;;  %87 = vperm.xlu0 %371, %v29_v6   ;;  %s377_s15 = scalar_lea.vmem %s297_s0, 256  ;;  %p382_p1 = scmp.lt.s32.totalorder %s297_s0, %s297_s0 }
   0xb   :  { %p378_p0 = scmp.ne.s32.totalorder %s297_s0, %s377_s15  ;;  %p383_p2 = scmp.lt.s32.totalorder %s377_s15, %s377_s15 }
   0xd   :  { %p384_p3 = por %p383_p2, %p382_p1 }
   0xe   :  { %84 = vperm.xlu1 %372, %v28_v7   ;;  %81 = vperm.xlu0 %371, %v27_v8  }
   0xf   :  { %p385_p4 = pnand %p384_p3, %p378_p0 }
  0x12   :  { %78 = vperm.xlu1 %372, %v26_v9   ;;  %75 = vperm.xlu0 %371, %v25_v10  }
  0x16   :  { %72 = vperm.xlu1 %372, %v24_v11   ;;  %69 = vperm.xlu0 %371, %v23_v12  }
  0x1a   :  { %66 = vperm.xlu1 %372, %v22_v13   ;;  %63 = vperm.xlu0 %371, %v21_v14  }
  0x1e   :  { %60 = vperm.xlu1 %372, %v20_v15   ;;  %57 = vperm.xlu0 %371, %v19_v16  }
  0x7d   :  { %v100_v19 = vpop.permute.xlu0 %99  ;;  %v94_v20 = vpop.permute.xlu1 %93 }
  0x7e   :  { %vm129_vm2 = vcmp.eq.s32.totalorder %v469_v21, %v94_v20  ;;  %vm133_vm4 = vcmp.eq.s32.totalorder %v469_v21, %v100_v19  ;;  %vm132_vm5 = vcmp.eq.s32.totalorder %v466_v18, %v100_v19  ;;  %vm128_vm8 = vcmp.eq.s32.totalorder %v466_v18, %v94_v20 }
  0x81   :  { %v103_v22 = vpop.permute.xlu0 %102  ;;  %v97_v23 = vpop.permute.xlu1 %96 }
  0x82   :  { %vm135_vm0 = vcmp.eq.s32.totalorder %v469_v21, %v103_v22  ;;  %vm134_vm1 = vcmp.eq.s32.totalorder %v466_v18, %v103_v22  ;;  %vm131_vm3 = vcmp.eq.s32.totalorder %v469_v21, %v97_v23  ;;  %vm130_vm9 = vcmp.eq.s32.totalorder %v466_v18, %v97_v23 }
  0x83   :  { %vm336_vm6 = vmpackc.low %vm135_vm0, %vm133_vm4 }
  0x84   :  { %337 = vmatprep.subr.msk.bf16.mxu0 %vm336_vm6, %v400_v26  ;;  %vm338_vm7 = vmpackc.low %vm134_vm1, %vm132_vm5 }
  0x85   :  { %v91_v24 = vpop.permute.xlu1 %90  ;;  %v88_v25 = vpop.permute.xlu0 %87  ;;  %vm340_vm10 = vmpackc.low %vm131_vm3, %vm129_vm2  ;;  %339 = vmatpush1.bf16.msk.msra.mxu0 %vm338_vm7, %v400_v26 }
  0x86   :  { %vm127_vm11 = vcmp.eq.s32.totalorder %v469_v21, %v91_v24  ;;  %vm125_vm12 = vcmp.eq.s32.totalorder %v469_v21, %v88_v25  ;;  %341 = vmatprep.subr.msk.bf16.mxu0 %vm340_vm10, %v400_v26  ;;  %vm342_vm13 = vmpackc.low %vm130_vm9, %vm128_vm8  ;;  %vm126_vm14 = vcmp.eq.s32.totalorder %v466_v18, %v91_v24  ;;  %vm124_vm15 = vcmp.eq.s32.totalorder %v466_v18, %v88_v25 }
  0x87   :  { %vm344_vm0 = vmpackc.low %vm127_vm11, %vm125_vm12 }
  0x88   :  { %vm346_vm3 = vmpackc.low %vm126_vm14, %vm124_vm15 }
  0x89   :  { %v85_v27 = vpop.permute.xlu1 %84  ;;  %v82_v28 = vpop.permute.xlu0 %81  ;;  %343 = vmatpush1.bf16.msk.msra.mxu0 %vm342_vm13, %v400_v26 }
  0x8a   :  { %vm123_vm1 = vcmp.eq.s32.totalorder %v469_v21, %v85_v27  ;;  %vm121_vm2 = vcmp.eq.s32.totalorder %v469_v21, %v82_v28  ;;  %345 = vmatprep.subr.msk.bf16.mxu0 %vm344_vm0, %v400_v26  ;;  %vm122_vm4 = vcmp.eq.s32.totalorder %v466_v18, %v85_v27  ;;  %vm120_vm5 = vcmp.eq.s32.totalorder %v466_v18, %v82_v28 }
  0x8b   :  { %vm348_vm6 = vmpackc.low %vm123_vm1, %vm121_vm2 }
  0x8c   :  { %vm350_vm9 = vmpackc.low %vm122_vm4, %vm120_vm5 }
  0x8d   :  { %v79_v29 = vpop.permute.xlu1 %78  ;;  %v76_v30 = vpop.permute.xlu0 %75  ;;  %347 = vmatpush1.bf16.msk.msra.mxu0 %vm346_vm3, %v400_v26 }
  0x8e   :  { %vm119_vm7 = vcmp.eq.s32.totalorder %v469_v21, %v79_v29  ;;  %vm117_vm8 = vcmp.eq.s32.totalorder %v469_v21, %v76_v30  ;;  %349 = vmatprep.subr.msk.bf16.mxu0 %vm348_vm6, %v400_v26  ;;  %vm118_vm10 = vcmp.eq.s32.totalorder %v466_v18, %v79_v29  ;;  %vm116_vm11 = vcmp.eq.s32.totalorder %v466_v18, %v76_v30 }
  0x8f   :  { %vm352_vm12 = vmpackc.low %vm119_vm7, %vm117_vm8 }
  0x90   :  { %vm354_vm15 = vmpackc.low %vm118_vm10, %vm116_vm11 }
  0x91   :  { %v73_v31 = vpop.permute.xlu1 %72  ;;  %v70_v32 = vpop.permute.xlu0 %69  ;;  %351 = vmatpush1.bf16.msk.msra.mxu0 %vm350_vm9, %v400_v26 }
  0x92   :  { %vm115_vm13 = vcmp.eq.s32.totalorder %v469_v21, %v73_v31  ;;  %vm113_vm14 = vcmp.eq.s32.totalorder %v469_v21, %v70_v32  ;;  %353 = vmatprep.subr.msk.bf16.mxu0 %vm352_vm12, %v400_v26  ;;  %vm114_vm0 = vcmp.eq.s32.totalorder %v466_v18, %v73_v31  ;;  %vm112_vm1 = vcmp.eq.s32.totalorder %v466_v18, %v70_v32 }
  0x93   :  { %vm356_vm2 = vmpackc.low %vm115_vm13, %vm113_vm14 }
  0x94   :  { %vm358_vm5 = vmpackc.low %vm114_vm0, %vm112_vm1  ;;  %vm275_vm0 = vcmp.eq.s32.totalorder %v274_v44, 4 }
  0x95   :  { %v67_v33 = vpop.permute.xlu1 %66  ;;  %v64_v34 = vpop.permute.xlu0 %63  ;;  %355 = vmatpush1.bf16.msk.msra.mxu0 %vm354_vm15, %v400_v26 }
  0x96   :  { %vm111_vm3 = vcmp.eq.s32.totalorder %v469_v21, %v67_v33  ;;  %vm109_vm4 = vcmp.eq.s32.totalorder %v469_v21, %v64_v34  ;;  %357 = vmatprep.subr.msk.bf16.mxu0 %vm356_vm2, %v400_v26  ;;  %vm110_vm6 = vcmp.eq.s32.totalorder %v466_v18, %v67_v33  ;;  %vm108_vm7 = vcmp.eq.s32.totalorder %v466_v18, %v64_v34 }
  0x97   :  { %vm360_vm8 = vmpackc.low %vm111_vm3, %vm109_vm4 }
  0x98   :  { %vm362_vm11 = vmpackc.low %vm110_vm6, %vm108_vm7 }
  0x99   :  { %v61_v35 = vpop.permute.xlu1 %60  ;;  %v58_v36 = vpop.permute.xlu0 %57  ;;  %359 = vmatpush1.bf16.msk.msra.mxu0 %vm358_vm5, %v400_v26 }
  0x9a   :  { %vm107_vm9 = vcmp.eq.s32.totalorder %v469_v21, %v61_v35  ;;  %vm105_vm10 = vcmp.eq.s32.totalorder %v469_v21, %v58_v36  ;;  %361 = vmatprep.subr.msk.bf16.mxu0 %vm360_vm8, %v400_v26  ;;  %vm106_vm12 = vcmp.eq.s32.totalorder %v466_v18, %v61_v35  ;;  %vm104_vm13 = vcmp.eq.s32.totalorder %v466_v18, %v58_v36 }
  0x9b   :  { %vm364_vm14 = vmpackc.low %vm107_vm9, %vm105_vm10 }
  0x9c   :  { %vm366_vm15 = vmpackc.low %vm106_vm12, %vm104_vm13 }
  0x9d   :  { %363 = vmatpush1.bf16.msk.msra.mxu0 %vm362_vm11, %v400_v26 }
  0x9e   :  { %365 = vmatprep.subr.msk.bf16.mxu0 %vm364_vm14, %v400_v26 }
  0xa1   :  { %367 = vmatpush1.bf16.msk.msra.mxu0 %vm366_vm15, %v400_v26 }
  0xa4   :  { %252 = vmatmul.mubr.bf16.vlgmr.msra.gmra.mxu0 %v218_v37 }
 0x164   :  { %v253_v38 = vpop.f32.mrf.mxu0 }
 0x165   :  { %v269_v39 = vmax.f32 %v253_v38, 1.0 }
 0x166   :  { %v255_v40 = vpop.f32.mrf.mxu0 }
 0x167   :  { %373 = vrcp.f32 %v269_v39  ;;  %v270_v41 = vmax.f32 %v255_v40, 1.0 }
 0x168   :  { %v257_v42 = vpop.f32.mrf.mxu0 }
 0x169   :  { %375 = vrcp.f32 %v270_v41 }
 0x16a   :  { %v258_v43 = vpop.f32.mrf.mxu0 }
 0x174   :  { %v374_v46 = vpop.eup %373 }
 0x175   :  { %v279_v47 = vrot.slane %v374_v46, %v278_v45 }
 0x176   :  { %v376_v48 = vpop.eup %375 }
 0x177   :  { %v284_v49 = vsel %vm275_vm0, 1.0, %v279_v47  ;;  %v283_v50 = vrot.slane %v376_v48, %v278_v45 }
 0x178   :  { %v286_v51 = vmul.f32 %v284_v49, %v253_v38 }
 0x179   :  { %v285_v52 = vsel %vm275_vm0, 1.0, %v283_v50 }
 0x17a   :  { %288 = vst [vmem:[#allocation3] sm:$0xff] %v286_v51  ;;  %v287_v53 = vmul.f32 %v285_v52, %v255_v40 }
 0x17c   :  { %289 = vst [vmem:[#allocation3 + $0x8] sm:$0xff] %v287_v53 }
 0x17d   :  { %388 = shalt.err (!%p385_p4)
}
 0x17e   :  { %299 = dma.vmem_to_hbm [thread:$0]  %s297_s0, 256, %s528_s2, [#allocation4]  }
 0x17f   :  { %397 = dma.done.wait [#allocation4], 256  }
 0x180   :  { %398 = vsyncadd [#allocation4], 4294967040 }
 0x181   :  { %303 = vsyncpa [#allocation4], 1 }

</bundles_post_ra>
